<compile_context>
chip_gen: v6e
topology: v6e:2x2x1
jax: 0.10.0
libtpu: 0.0.40
codegen_flags: <defaults>
</compile_context>

<pallas_src>
import jax
import jax.numpy as jnp
from jax.experimental import pallas as pl
from jax.experimental.pallas import tpu as pltpu


def _res_actor_kernel(ls_ref, la_ref, s_ref, a_ref,
                      w1_ref, w2_ref, w3_ref, b_ref, ma_ref, o_ref):
    """One batch tile of the 3-layer MLP. All weights resident in VMEM."""
    H = w2_ref.shape[0]            # hidden width (256)
    ad = o_ref.shape[1]            # action_dim (compact output, no lane pad)
    bf16 = jnp.bfloat16

    # Fused concat (layer-1 LHS): lane-axis concat in f32, single cast to bf16.
    # K = dim_in (= 40 here) -> layer 1 costs exactly one MXU pass per tile.
    x = jnp.concatenate(
        [ls_ref[...], la_ref[...], s_ref[...], a_ref[...]], axis=1
    ).astype(bf16)

    # Layer 1: one dot against the whole (dim_in, H) weight (no row slices).
    h1 = jnp.dot(x, w1_ref[...], preferred_element_type=jnp.float32)
    h1 = jnp.maximum(h1 + b_ref[0:1, :H], 0.0)

    # Layer 2.
    h2 = jnp.dot(h1.astype(bf16), w2_ref[...],
                 preferred_element_type=jnp.float32)
    h2 = jnp.maximum(h2 + b_ref[1:2, :H], 0.0)

    # Layer 3 (compact action_dim lanes) + tanh * max_action (SMEM scalar).
    h3 = jnp.dot(h2.astype(bf16), w3_ref[...],
                 preferred_element_type=jnp.float32)
    h3 = h3 + b_ref[2:3, :ad]
    o_ref[...] = ma_ref[0] * jnp.tanh(h3)


def init_params(key, state_dim, action_dim):
    """f32 master params, nn.Linear-style init, stored as [in, out]."""
    dim_in = (state_dim + action_dim) * 2

    def linear(key, fan_in, fan_out):
        kw, kb = jax.random.split(key)
        bound = 1.0 / jnp.sqrt(float(fan_in))
        w = jax.random.uniform(kw, (fan_in, fan_out), jnp.float32, -bound, bound)
        b = jax.random.uniform(kb, (1, fan_out), jnp.float32, -bound, bound)
        return w, b

    k1, k2, k3 = jax.random.split(key, 3)
    w1, b1 = linear(k1, dim_in, 256)
    w2, b2 = linear(k2, 256, 256)
    w3, b3 = linear(k3, 256, action_dim)
    return (w1, b1, w2, b2, w3, b3)


def pack_params(raw_params):
    """One-time (cold-path) conversion to kernel-ready layout:
       bf16 weights (f32 accumulation in-kernel), biases packed into one
       (3, max(H, action_dim)) f32 buffer. No output-lane padding."""
    w1, b1, w2, b2, w3, b3 = raw_params
    H = w2.shape[0]
    ad = w3.shape[1]
    bw = max(H, ad)
    bias = jnp.zeros((3, bw), jnp.float32)
    bias = bias.at[0, :H].set(b1[0])
    bias = bias.at[1, :H].set(b2[0])
    bias = bias.at[2, :ad].set(b3[0])
    return (w1.astype(jnp.bfloat16), w2.astype(jnp.bfloat16),
            w3.astype(jnp.bfloat16), bias, ad)


_BATCH_BUCKETS = (8, 16, 32, 64, 128, 256, 512, 1024)


def _bucket_batch(b):
    """Round batch up to a fixed bucket so tile shapes (and compiles) are stable."""
    for cap in _BATCH_BUCKETS:
        if b <= cap:
            return cap
    return -(-b // 1024) * 1024


def _choose_tile(bp):
    """Tile height: multiple of 8, <= 1024 rows, and >= 2 grid steps whenever
       bp >= 16 so both v7x TensorCores get work (harmless on v5e/v6e)."""
    if bp <= 8:
        return bp
    return min(1024, bp // 2)


def res_actor_forward(last_state, last_action, state, action, packed, max_action):
    """JAX wrapper reproducing ResActor.forward semantics."""
    w1, w2, w3, bias, action_dim = packed
    B = last_state.shape[0]

    Bp = _bucket_batch(B)
    tm = _choose_tile(Bp)
    nb = Bp // tm

    if Bp != B:
        pad = ((0, Bp - B), (0, 0))
        last_state = jnp.pad(last_state, pad)
        last_action = jnp.pad(last_action, pad)
        state = jnp.pad(state, pad)
        action = jnp.pad(action, pad)

    # TODO(synk): accept bf16 activations directly if the upstream producer can
    # emit them natively (halves input DMA); a standalone wrapper cast here
    # would just add its own HBM pass, so it is intentionally not done.
    ma = jnp.full((1,), max_action, jnp.float32)   # SMEM scalar, no recompile

    def row_spec(a):
        return pl.BlockSpec((tm, a.shape[1]), lambda i: (i, 0))

    def resident_spec(a):      # constant index_map -> weights resident across tiles
        return pl.BlockSpec(a.shape, lambda i: (0, 0))

    out = pl.pallas_call(
        _res_actor_kernel,
        out_shape=jax.ShapeDtypeStruct((Bp, action_dim), jnp.float32),
        grid=(nb,),
        in_specs=[
            row_spec(last_state), row_spec(last_action),
            row_spec(state), row_spec(action),
            resident_spec(w1), resident_spec(w2), resident_spec(w3),
            resident_spec(bias),
            pl.BlockSpec(memory_space=pltpu.MemorySpace.SMEM),
        ],
        out_specs=pl.BlockSpec((tm, action_dim), lambda i: (i, 0)),
        compiler_params=pltpu.CompilerParams(
            dimension_semantics=("parallel",)),
    )(last_state, last_action, state, action, w1, w2, w3, bias, ma)

    return out[:B]


def reference_forward(last_state, last_action, state, action, raw_params,
                      max_action):
    """Pure-JAX reference mirroring the kernel's bf16-weight / f32-acc math."""
    w1, b1, w2, b2, w3, b3 = raw_params
    bf16 = jnp.bfloat16
    x = jnp.concatenate([last_state, last_action, state, action], axis=1)
    h1 = jnp.dot(x.astype(bf16), w1.astype(bf16),
                 preferred_element_type=jnp.float32) + b1
    h1 = jnp.maximum(h1, 0.0)
    h2 = jnp.dot(h1.astype(bf16), w2.astype(bf16),
                 preferred_element_type=jnp.float32) + b2
    h2 = jnp.maximum(h2, 0.0)
    h3 = jnp.dot(h2.astype(bf16), w3.astype(bf16),
                 preferred_element_type=jnp.float32) + b3
    return max_action * jnp.tanh(h3)


if __name__ == "__main__":
    state_dim = 16
    action_dim = 4
    max_action = 2.0
    batch = 8

    key = jax.random.PRNGKey(0)
    k_params, k_ls, k_la, k_s, k_a = jax.random.split(key, 5)

    raw_params = init_params(k_params, state_dim, action_dim)
    packed = pack_params(raw_params)

    last_state = jax.random.normal(k_ls, (batch, state_dim), jnp.float32)
    last_action = jax.random.normal(k_la, (batch, action_dim), jnp.float32)
    state = jax.random.normal(k_s, (batch, state_dim), jnp.float32)
    action = jax.random.normal(k_a, (batch, action_dim), jnp.float32)

    out = res_actor_forward(last_state, last_action, state, action, packed,
                            max_action)
    out = jax.block_until_ready(out)

    ref = reference_forward(last_state, last_action, state, action, raw_params,
                            max_action)
    assert out.shape == (batch, action_dim), out.shape
    err = float(jnp.abs(out - ref).max())
    # bf16 weights -> looser tolerance than pure-f32 (quantization ~1e-3 rel).
    assert jnp.allclose(out, ref, atol=1e-2, rtol=1e-2), err

    print("KERNEL_OK")
</pallas_src>

<mosaic_0001>
module attributes {stable_mosaic.version = 11 : i64} {
  func.func @_res_actor_kernel(%arg0: i32, %arg1: memref<8x16xf32, #tpu.memory_space<vmem>>, %arg2: memref<8x4xf32, #tpu.memory_space<vmem>>, %arg3: memref<8x16xf32, #tpu.memory_space<vmem>>, %arg4: memref<8x4xf32, #tpu.memory_space<vmem>>, %arg5: memref<40x256xbf16, #tpu.memory_space<vmem>>, %arg6: memref<256x256xbf16, #tpu.memory_space<vmem>>, %arg7: memref<256x4xbf16, #tpu.memory_space<vmem>>, %arg8: memref<3x256xf32, #tpu.memory_space<vmem>>, %arg9: memref<1xf32, #tpu.memory_space<smem>>, %arg10: memref<8x4xf32, #tpu.memory_space<vmem>>) attributes {dimension_semantics = [#tpu.dimension_semantics<parallel>], iteration_bounds = array<i64: 1>, scalar_prefetch = 0 : i64, scratch_operands = 0 : i64, tpu.core_type = #tpu.core_type<tc>, window_params = [{transform_indices = @transform_0, window_bounds = array<i64: 8, 16>}, {transform_indices = @transform_1, window_bounds = array<i64: 8, 4>}, {transform_indices = @transform_2, window_bounds = array<i64: 8, 16>}, {transform_indices = @transform_3, window_bounds = array<i64: 8, 4>}, {pipeline_mode = #tpu.pipeline_mode<synchronous>, transform_indices = @transform_4, window_bounds = array<i64: 40, 256>}, {pipeline_mode = #tpu.pipeline_mode<synchronous>, transform_indices = @transform_5, window_bounds = array<i64: 256, 256>}, {pipeline_mode = #tpu.pipeline_mode<synchronous>, transform_indices = @transform_6, window_bounds = array<i64: 256, 4>}, {pipeline_mode = #tpu.pipeline_mode<synchronous>, transform_indices = @transform_7, window_bounds = array<i64: 3, 256>}, {transform_indices = @transform_8, window_bounds = array<i64: 1>}, {transform_indices = @transform_9, window_bounds = array<i64: 8, 4>}]} {
    %c0 = arith.constant 0 : index
    %c0_0 = arith.constant 0 : index
    %0 = vector.load %arg1[%c0, %c0_0] : memref<8x16xf32, #tpu.memory_space<vmem>>, vector<8x16xf32>
    %c0_1 = arith.constant 0 : index
    %c0_2 = arith.constant 0 : index
    %1 = vector.load %arg2[%c0_1, %c0_2] : memref<8x4xf32, #tpu.memory_space<vmem>>, vector<8x4xf32>
    %c0_3 = arith.constant 0 : index
    %c0_4 = arith.constant 0 : index
    %2 = vector.load %arg3[%c0_3, %c0_4] : memref<8x16xf32, #tpu.memory_space<vmem>>, vector<8x16xf32>
    %c0_5 = arith.constant 0 : index
    %c0_6 = arith.constant 0 : index
    %3 = vector.load %arg4[%c0_5, %c0_6] : memref<8x4xf32, #tpu.memory_space<vmem>>, vector<8x4xf32>
    %4 = tpu.concatenate %0, %1, %2, %3 in 1 : vector<8x16xf32>, vector<8x4xf32>, vector<8x16xf32>, vector<8x4xf32> -> vector<8x40xf32>
    %5 = arith.truncf %4 : vector<8x40xf32> to vector<8x40xbf16>
    %c0_7 = arith.constant 0 : index
    %c0_8 = arith.constant 0 : index
    %6 = vector.load %arg5[%c0_7, %c0_8] : memref<40x256xbf16, #tpu.memory_space<vmem>>, vector<40x256xbf16>
    %cst = arith.constant dense<0.000000e+00> : vector<8x256xf32>
    %7 = tpu.matmul %5, %6, %cst {dimension_numbers = #tpu.dot_dimension_numbers<[1], [0], [0], [1], [0, 0, 1, 1], [], []>} : vector<8x40xbf16>, vector<40x256xbf16>, vector<8x256xf32> -> vector<8x256xf32>
    %c0_9 = arith.constant 0 : index
    %c0_10 = arith.constant 0 : index
    %8 = vector.load %arg8[%c0_9, %c0_10] : memref<3x256xf32, #tpu.memory_space<vmem>>, vector<1x256xf32>
    %9 = vector.broadcast %8 : vector<1x256xf32> to vector<8x256xf32>
    %10 = arith.addf %7, %9 : vector<8x256xf32>
    %cst_11 = arith.constant 0.000000e+00 : f32
    %11 = vector.broadcast %cst_11 : f32 to vector<8x256xf32>
    %12 = arith.maximumf %10, %11 : vector<8x256xf32>
    %13 = arith.truncf %12 : vector<8x256xf32> to vector<8x256xbf16>
    %c0_12 = arith.constant 0 : index
    %c0_13 = arith.constant 0 : index
    %14 = vector.load %arg6[%c0_12, %c0_13] : memref<256x256xbf16, #tpu.memory_space<vmem>>, vector<256x256xbf16>
    %cst_14 = arith.constant dense<0.000000e+00> : vector<8x256xf32>
    %15 = tpu.matmul %13, %14, %cst_14 {dimension_numbers = #tpu.dot_dimension_numbers<[1], [0], [0], [1], [0, 0, 1, 1], [], []>} : vector<8x256xbf16>, vector<256x256xbf16>, vector<8x256xf32> -> vector<8x256xf32>
    %c1 = arith.constant 1 : index
    %c0_15 = arith.constant 0 : index
    %16 = vector.load %arg8[%c1, %c0_15] : memref<3x256xf32, #tpu.memory_space<vmem>>, vector<1x256xf32>
    %17 = vector.broadcast %16 : vector<1x256xf32> to vector<8x256xf32>
    %18 = arith.addf %15, %17 : vector<8x256xf32>
    %cst_16 = arith.constant 0.000000e+00 : f32
    %19 = vector.broadcast %cst_16 : f32 to vector<8x256xf32>
    %20 = arith.maximumf %18, %19 : vector<8x256xf32>
    %21 = arith.truncf %20 : vector<8x256xf32> to vector<8x256xbf16>
    %c0_17 = arith.constant 0 : index
    %c0_18 = arith.constant 0 : index
    %22 = vector.load %arg7[%c0_17, %c0_18] : memref<256x4xbf16, #tpu.memory_space<vmem>>, vector<256x4xbf16>
    %cst_19 = arith.constant dense<0.000000e+00> : vector<8x4xf32>
    %23 = tpu.matmul %21, %22, %cst_19 {dimension_numbers = #tpu.dot_dimension_numbers<[1], [0], [0], [1], [0, 0, 1, 1], [], []>} : vector<8x256xbf16>, vector<256x4xbf16>, vector<8x4xf32> -> vector<8x4xf32>
    %c2 = arith.constant 2 : index
    %c0_20 = arith.constant 0 : index
    %24 = vector.load %arg8[%c2, %c0_20] : memref<3x256xf32, #tpu.memory_space<vmem>>, vector<1x4xf32>
    %25 = vector.broadcast %24 : vector<1x4xf32> to vector<8x4xf32>
    %26 = arith.addf %23, %25 : vector<8x4xf32>
    %c0_21 = arith.constant 0 : index
    %27 = memref.load %arg9[%c0_21] : memref<1xf32, #tpu.memory_space<smem>>
    %28 = math.tanh %26 : vector<8x4xf32>
    %29 = vector.broadcast %27 : f32 to vector<8x4xf32>
    %30 = arith.mulf %29, %28 : vector<8x4xf32>
    %c0_22 = arith.constant 0 : index
    %c0_23 = arith.constant 0 : index
    %31 = vector.load %arg10[%c0_22, %c0_23] : memref<8x4xf32, #tpu.memory_space<vmem>>, vector<8x4xf32>
    tpu.vector_store %arg10[%c0_22, %c0_23], %30 {strides = array<i32>} : memref<8x4xf32, #tpu.memory_space<vmem>>, vector<8x4xf32>,
    return
  }
  func.func @transform_0(%arg0: i32) -> (i32, i32) {
    %c0_i32 = arith.constant 0 : i32
    %c0_i32_0 = arith.constant 0 : i32
    return %arg0, %c0_i32 : i32, i32
  }
  func.func @transform_1(%arg0: i32) -> (i32, i32) {
    %c0_i32 = arith.constant 0 : i32
    %c0_i32_0 = arith.constant 0 : i32
    return %arg0, %c0_i32 : i32, i32
  }
  func.func @transform_2(%arg0: i32) -> (i32, i32) {
    %c0_i32 = arith.constant 0 : i32
    %c0_i32_0 = arith.constant 0 : i32
    return %arg0, %c0_i32 : i32, i32
  }
  func.func @transform_3(%arg0: i32) -> (i32, i32) {
    %c0_i32 = arith.constant 0 : i32
    %c0_i32_0 = arith.constant 0 : i32
    return %arg0, %c0_i32 : i32, i32
  }
  func.func @transform_4(%arg0: i32) -> (i32, i32) {
    %c0_i32 = arith.constant 0 : i32
    %c0_i32_0 = arith.constant 0 : i32
    %c0_i32_1 = arith.constant 0 : i32
    return %c0_i32, %c0_i32_0 : i32, i32
  }
  func.func @transform_5(%arg0: i32) -> (i32, i32) {
    %c0_i32 = arith.constant 0 : i32
    %c0_i32_0 = arith.constant 0 : i32
    %c0_i32_1 = arith.constant 0 : i32
    return %c0_i32, %c0_i32_0 : i32, i32
  }
  func.func @transform_6(%arg0: i32) -> (i32, i32) {
    %c0_i32 = arith.constant 0 : i32
    %c0_i32_0 = arith.constant 0 : i32
    %c0_i32_1 = arith.constant 0 : i32
    return %c0_i32, %c0_i32_0 : i32, i32
  }
  func.func @transform_7(%arg0: i32) -> (i32, i32) {
    %c0_i32 = arith.constant 0 : i32
    %c0_i32_0 = arith.constant 0 : i32
    %c0_i32_1 = arith.constant 0 : i32
    return %c0_i32, %c0_i32_0 : i32, i32
  }
  func.func @transform_8(%arg0: i32) -> i32 {
    %c0_i32 = arith.constant 0 : i32
    %c0_i32_0 = arith.constant 0 : i32
    return %c0_i32 : i32
  }
  func.func @transform_9(%arg0: i32) -> (i32, i32) {
    %c0_i32 = arith.constant 0 : i32
    %c0_i32_0 = arith.constant 0 : i32
    return %arg0, %c0_i32 : i32, i32
  }
}

</mosaic_0001>

<bundles_post_ra>
// kernel: tpu_custom_call.1
= control target key start
LH: loop header
LB: loop body
LE: loop exit
PB: predicated region body
PF: predicated region fallthrough
CT: control target
= control target key end

     0   :  { %15 = vsyncpa [#allocation4], 0  ;;  %s786_s30 = smov [#allocation3]   ;;  %s936_s0 = inlined_call_operand.vmem [shape: f32[8,16], index: 0, kind: input, shape index: {}]   ;;  %s937_s1 = inlined_call_operand.vmem [shape: f32[8,4], index: 1, kind: input, shape index: {}]   ;;  %s938_s2 = inlined_call_operand.vmem [shape: f32[8,16], index: 2, kind: input, shape index: {}]   ;;  %s939_s3 = inlined_call_operand.vmem [shape: f32[8,4], index: 3, kind: input, shape index: {}]   ;;  %s940_s4 = inlined_call_operand.vmem [shape: bf16[40,256], index: 4, kind: input, shape index: {}]   ;;  %s941_s5 = inlined_call_operand.hbm [shape: bf16[256,256], index: 5, kind: input, shape index: {}]   ;;  %s942_s6 = inlined_call_operand.vmem [shape: bf16[256,4], index: 6, kind: input, shape index: {}]   ;;  %s943_s7 = inlined_call_operand.vmem [shape: f32[3,256], index: 7, kind: input, shape index: {}]   ;;  %s944_s8 = inlined_call_operand.<no memory space> [shape: f32[1], index: 8, kind: input, shape index: {}]   ;;  %s945_s9 = inlined_call_operand.vmem [shape: f32[8,4], index: 9, kind: output, shape index: {}]  }
   0x1   :  { %s31_s10 = sshll.u32 %s786_s30, 4  ;;  %s32_s10 = int_to_ptr.vmem [resolvable:$true] %s31_s10 }
   0x2   :  { %s772_s11 = scalar_lea.vmem %s32_s10, 4096  ;;  %p777_p1 = scmp.lt.s32.totalorder %s32_s10, %s32_s10 }
   0x3   :  { %p773_p0 = scmp.ne.s32.totalorder %s32_s10, %s772_s11  ;;  %p778_p2 = scmp.lt.s32.totalorder %s772_s11, %s772_s11 }
   0x5   :  { %p779_p3 = por %p778_p2, %p777_p1 }
   0x7   :  { %p780_p4 = pnand %p779_p3, %p773_p0 }
   0x9   :  { %783 = shalt.err (!%p780_p4)
}
   0xa   :  { %s787_s12 = smov 128   ;;  %s788_s13 = smov 8  }
   0xb   :  { %37 = dma.hbm_to_vmem [thread:$0]  %s941_s5, 4096, %s32_s10, [#allocation4], %s787_s12, %s787_s12, %s788_s13  }
   0xc   :  { %784 = dma.done.wait [#allocation4], 4096  }
   0xd   :  { %785 = vsyncadd [#allocation4], 4294963200  ;;  %v789_v0 = vmov 0   ;;  %v49_v1 = vld [vmem:[%s937_s1] sm:$0xff]  ;;  %s790_s20 = smov 16   ;;  %s791_s23 = smov 36  }
   0xe   :  { %156 = vmatprep.mubr.bf16.mxu0 %v789_v0  ;;  %v51_v2 = vld [vmem:[%s939_s3] sm:$0xff]  ;;  %53 = vrot.lane.b32.xlu0 %v49_v1, %s790_s20  ;;  %vm117_vm0 = vcmask 1043456   ;;  %v692_v7 = vld [vmem:[%s940_s4 + $0x14] ss:$8 sps:$4 sm:$0xff]   ;;  %v694_v9 = vld [vmem:[%s940_s4 + $0x10] ss:$8 sps:$4 sm:$0xff]   ;;  %v78_v0 = vlaneseq }
   0xf   :  { %v50_v3 = vld [vmem:[%s938_s2] sm:$0xff]  ;;  %61 = vrot.lane.b32.xlu1 %v51_v2, %s791_s23  ;;  %s792_s2 = smov 20   ;;  %v698_v10 = vld [vmem:[#allocation3 + $0x74] ss:$8 sps:$4 sm:$0xff]   ;;  %v700_v11 = vld [vmem:[#allocation3 + $0x70] ss:$8 sps:$4 sm:$0xff]  }
  0x10   :  { %v75_v4 = vld [vmem:[%s940_s4 + $0x20] sm:$0xff]  ;;  %374 = vmatprep.subr.bf16.mxu1 %v698_v10  ;;  %v704_v16 = vld [vmem:[#allocation3 + $0x54] ss:$8 sps:$4 sm:$0xff]   ;;  %v706_v17 = vld [vmem:[#allocation3 + $0x50] ss:$8 sps:$4 sm:$0xff]   ;;  %vm64_vm1 = vcmask 130048  }
  0x11   :  { %v608_v5 = vcombine.high %v75_v4, %v75_v4  ;;  %v607_v6 = vcombine.low %v75_v4, %v75_v4  ;;  %v695_v12 = vld [vmem:[%s940_s4 + $0x4] ss:$8 sps:$4 sm:$0xff]   ;;  %375 = vmatpush1.bf16.msra.mxu1 %v700_v11  ;;  %v703_v14 = vld [vmem:[#allocation3 + $0x60] ss:$8 sps:$4 sm:$0xff]   ;;  %v710_v20 = vld [vmem:[#allocation3 + $0x34] ss:$8 sps:$4 sm:$0xff]  }
  0x12   :  { %57 = vrot.lane.b32.xlu0 %v50_v3, %s792_s2  ;;  %v701_v13 = vld [vmem:[#allocation3 + $0x64] ss:$8 sps:$4 sm:$0xff]   ;;  %v697_v15 = vld [vmem:[%s940_s4] ss:$8 sps:$4 sm:$0xff]   ;;  %v712_v21 = vld [vmem:[#allocation3 + $0x30] ss:$8 sps:$4 sm:$0xff]  }
  0x13   :  { %609 = vmatprep.subr.msk.bf16.mxu0 %vm117_vm0, %v608_v5  ;;  %v119_v8 = vsel %vm117_vm0, %v607_v6, 0  ;;  %376 = vmatprep.subr.bf16.mxu1 %v701_v13  ;;  %v707_v18 = vld [vmem:[#allocation3 + $0x44] ss:$8 sps:$4 sm:$0xff]   ;;  %v709_v19 = vld [vmem:[#allocation3 + $0x40] ss:$8 sps:$4 sm:$0xff]   ;;  %vm66_vm2 = vcmask 162816  }
  0x14   :  { %135 = vmatpush1.bf16.msra.mxu0 %v119_v8  ;;  %v713_v22 = vld [vmem:[#allocation3 + $0x24] ss:$8 sps:$4 sm:$0xff]   ;;  %v715_v23 = vld [vmem:[#allocation3 + $0x20] ss:$8 sps:$4 sm:$0xff]   ;;  %v716_v24 = vld [vmem:[#allocation3 + $0x14] ss:$8 sps:$4 sm:$0xff]  }
  0x15   :  { %136 = vmatprep.subr.bf16.mxu0 %v692_v7  ;;  %377 = vmatpush1.bf16.msra.mxu1 %v703_v14  ;;  %v718_v25 = vld [vmem:[#allocation3 + $0x10] ss:$8 sps:$4 sm:$0xff]   ;;  %v719_v26 = vld [vmem:[#allocation3 + $0x4] ss:$8 sps:$4 sm:$0xff]   ;;  %v721_v27 = vld [vmem:[#allocation3] ss:$8 sps:$4 sm:$0xff]  }
  0x16   :  { %378 = vmatprep.subr.bf16.mxu1 %v704_v16  ;;  %v722_v28 = vld [vmem:[#allocation3 + $0xf4] ss:$8 sps:$4 sm:$0xff]   ;;  %v724_v29 = vld [vmem:[#allocation3 + $0xf0] ss:$8 sps:$4 sm:$0xff]   ;;  %v725_v30 = vld [vmem:[#allocation3 + $0xe4] ss:$8 sps:$4 sm:$0xff]  }
  0x17   :  { %v727_v31 = vld [vmem:[#allocation3 + $0xe0] ss:$8 sps:$4 sm:$0xff]   ;;  %v728_v32 = vld [vmem:[#allocation3 + $0xd4] ss:$8 sps:$4 sm:$0xff]   ;;  %v730_v33 = vld [vmem:[#allocation3 + $0xd0] ss:$8 sps:$4 sm:$0xff]  }
  0x18   :  { %137 = vmatpush1.bf16.msra.mxu0 %v694_v9  ;;  %v731_v34 = vld [vmem:[#allocation3 + $0xc4] ss:$8 sps:$4 sm:$0xff]   ;;  %v733_v35 = vld [vmem:[#allocation3 + $0xc0] ss:$8 sps:$4 sm:$0xff]   ;;  %v734_v36 = vld [vmem:[#allocation3 + $0xb4] ss:$8 sps:$4 sm:$0xff]  }
  0x19   :  { %138 = vmatprep.subr.bf16.mxu0 %v695_v12  ;;  %379 = vmatpush1.bf16.msra.mxu1 %v706_v17  ;;  %v736_v37 = vld [vmem:[#allocation3 + $0xb0] ss:$8 sps:$4 sm:$0xff]   ;;  %v737_v38 = vld [vmem:[#allocation3 + $0xa4] ss:$8 sps:$4 sm:$0xff]   ;;  %v739_v39 = vld [vmem:[#allocation3 + $0xa0] ss:$8 sps:$4 sm:$0xff]  }
  0x1a   :  { %380 = vmatprep.subr.bf16.mxu1 %v707_v18  ;;  %v48_v41 = vld [vmem:[%s936_s0] sm:$0xff]  ;;  %vm68_vm3 = vcmask 293888   ;;  %vm113_vm4 = vcmask 326656   ;;  %v740_v48 = vld [vmem:[#allocation3 + $0x94] ss:$8 sps:$4 sm:$0xff]   ;;  %v750_v56 = vld [vmem:[%s942_s6 + $0x68] sm:$0xff]  }
  0x1b   :  { %v742_v49 = vld [vmem:[#allocation3 + $0x90] ss:$8 sps:$4 sm:$0xff]   ;;  %v743_v50 = vld [vmem:[#allocation3 + $0x84] ss:$8 sps:$4 sm:$0xff]   ;;  %v745_v51 = vld [vmem:[#allocation3 + $0x80] ss:$8 sps:$4 sm:$0xff]  }
  0x1c   :  { %139 = vmatpush1.bf16.msra.mxu0 %v697_v15  ;;  %v746_v52 = vld [vmem:[%s942_s6 + $0x78] sm:$0xff]   ;;  %v748_v54 = vld [vmem:[%s942_s6 + $0x70] sm:$0xff]   ;;  %v751_v57 = vld [vmem:[%s942_s6 + $0x28] sm:$0xff]   ;;  %v79_v1 = vshrl.u32 %v78_v0, 7  ;;  %vm596_vm5 = vcmask 31744  }
  0x1d   :  { %381 = vmatpush1.bf16.msra.mxu1 %v709_v19  ;;  %v747_v53 = vld [vmem:[%s942_s6 + $0x38] sm:$0xff]   ;;  %661 = vmatprep.subr.bf16.mxu0 %v746_v52  ;;  %v749_v55 = vld [vmem:[%s942_s6 + $0x30] sm:$0xff]   ;;  %v752_v58 = vld [vmem:[%s942_s6 + $0x60] sm:$0xff]  }
  0x1e   :  { %382 = vmatprep.subr.bf16.mxu1 %v710_v20  ;;  %v753_v59 = vld [vmem:[%s942_s6 + $0x20] sm:$0xff]   ;;  %v754_v60 = vld [vmem:[%s942_s6 + $0x58] sm:$0xff]   ;;  %v756_v62 = vld [vmem:[%s942_s6 + $0x50] sm:$0xff]   ;;  %v80_v2 = vsub.s32 0, %v79_v1  ;;  %v84_v4 = vsub.s32 1, %v79_v1 }
  0x1f   :  { %v755_v61 = vld [vmem:[%s942_s6 + $0x18] sm:$0xff]   ;;  %v757_v63 = vld [vmem:[%s942_s6 + $0x10] sm:$0xff]   ;;  %v76_v3 = vld [vmem:[%s943_s7] ss:$4 sm:$0x3] }
  0x20   :  { %v81_v5 = vrot.slane %v76_v3, %v80_v2  ;;  %v85_v6 = vrot.slane %v76_v3, %v84_v4  ;;  %v758_v17 = vld [vmem:[%s942_s6 + $0x48] sm:$0xff]   ;;  %v760_v19 = vld [vmem:[%s942_s6 + $0x40] sm:$0xff]  }
  0x21   :  { %383 = vmatpush1.bf16.msra.mxu1 %v712_v21  ;;  %v759_v18 = vld [vmem:[%s942_s6 + $0x8] sm:$0xff]   ;;  %v761_v20 = vld [vmem:[%s942_s6] sm:$0xff]  }
  0x22   :  { %384 = vmatprep.subr.bf16.mxu1 %v713_v22  ;;  %v611_v21 = vld [vmem:[%s943_s7 + $0x1] ss:$4 sm:$0x3] }
  0x23   :  { %v207_v22 = vrot.slane %v611_v21, %v80_v2 }
  0x25   :  { %385 = vmatpush1.bf16.msra.mxu1 %v715_v23  ;;  %v211_v23 = vrot.slane %v611_v21, %v84_v4 }
  0x26   :  { %386 = vmatprep.subr.bf16.mxu1 %v716_v24 }
  0x29   :  { %387 = vmatpush1.bf16.msra.mxu1 %v718_v25 }
  0x2a   :  { %388 = vmatprep.subr.bf16.mxu1 %v719_v26 }
  0x2d   :  { %389 = vmatpush1.bf16.msra.mxu1 %v721_v27 }
  0x2e   :  { %390 = vmatprep.subr.bf16.mxu1 %v722_v28 }
  0x31   :  { %391 = vmatpush2.bf16.msra.mxu1 %v724_v29 }
  0x32   :  { %392 = vmatprep.subr.bf16.mxu1 %v725_v30 }
  0x35   :  { %393 = vmatpush2.bf16.msra.mxu1 %v727_v31 }
  0x36   :  { %394 = vmatprep.subr.bf16.mxu1 %v728_v32 }
  0x39   :  { %395 = vmatpush2.bf16.msra.mxu1 %v730_v33 }
  0x3a   :  { %396 = vmatprep.subr.bf16.mxu1 %v731_v34 }
  0x3d   :  { %397 = vmatpush2.bf16.msra.mxu1 %v733_v35  ;;  %v644_v35 = vld [vmem:[%s943_s7 + $0x2] ss:$0 sm:$0xff] }
  0x3e   :  { %398 = vmatprep.subr.bf16.mxu1 %v734_v36 }
  0x41   :  { %399 = vmatpush2.bf16.msra.mxu1 %v736_v37 }
  0x42   :  { %400 = vmatprep.subr.bf16.mxu1 %v737_v38 }
  0x45   :  { %401 = vmatpush2.bf16.msra.mxu1 %v739_v39 }
  0x46   :  { %402 = vmatprep.subr.bf16.mxu1 %v740_v48 }
  0x49   :  { %403 = vmatpush2.bf16.msra.mxu1 %v742_v49 }
  0x4a   :  { %404 = vmatprep.subr.bf16.mxu1 %v743_v50 }
  0x4d   :  { %405 = vmatpush2.bf16.msra.mxu1 %v745_v51 }
  0x80   :  { %v54_v40 = vpop.permute.xlu0 %53 }
  0x81   :  { %v62_v42 = vpop.permute.xlu1 %61  ;;  %v65_v43 = vsel %vm64_vm1, %v48_v41, %v54_v40  ;;  %v594_v41 = vstv %s944_s8 }
  0x84   :  { %v58_v44 = vpop.permute.xlu0 %57 }
  0x85   :  { %v67_v45 = vsel %vm66_vm2, %v65_v43, %v58_v44 }
  0x86   :  { %v69_v46 = vsel %vm68_vm3, %v67_v45, %v62_v42 }
  0x87   :  { %v70_v47 = vpack.c.bf16 %v69_v46, %v69_v46 }
  0x89   :  { %610 = vmatmul.mubr.msk.bf16.vlgmr.msra.gmra.mxu0 %vm113_vm4, %v70_v47 }
  0x8a   :  { %662 = vmatpush3.bf16.msra.mxu0 %v747_v53 }
  0x8b   :  { %663 = vmatprep.subr.bf16.mxu0 %v748_v54 }
  0x8e   :  { %664 = vmatpush3.bf16.msra.mxu0 %v749_v55 }
  0x8f   :  { %665 = vmatprep.subr.bf16.mxu0 %v750_v56 }
  0x92   :  { %666 = vmatpush3.bf16.msra.mxu0 %v751_v57 }
  0x93   :  { %667 = vmatprep.subr.bf16.mxu0 %v752_v58 }
  0x96   :  { %668 = vmatpush3.bf16.msra.mxu0 %v753_v59 }
  0x97   :  { %669 = vmatprep.subr.bf16.mxu0 %v754_v60 }
  0x9a   :  { %670 = vmatpush3.bf16.msra.mxu0 %v755_v61 }
  0x9b   :  { %671 = vmatprep.subr.bf16.mxu0 %v756_v62 }
  0x9e   :  { %672 = vmatpush3.bf16.msra.mxu0 %v757_v63 }
  0x9f   :  { %673 = vmatprep.subr.bf16.mxu0 %v758_v17 }
  0xa2   :  { %674 = vmatpush3.bf16.msra.mxu0 %v759_v18 }
  0xa3   :  { %675 = vmatprep.subr.bf16.mxu0 %v760_v19 }
  0xa6   :  { %676 = vmatpush3.bf16.msra.mxu0 %v761_v20 }
 0x149   :  { %v158_v7 = vpop.f32.mrf.mxu0 }
 0x14a   :  { %v159_v8 = vadd.f32 %v158_v7, %v81_v5 }
 0x14b   :  { %v160_v9 = vpop.f32.mrf.mxu0 }
 0x14c   :  { %v161_v10 = vadd.f32 %v160_v9, %v85_v6  ;;  %v165_v11 = vmax.f32 %v159_v8, 0.0 }
 0x14d   :  { %v162_v12 = vpop.f32.mrf.mxu0 }
 0x14e   :  { %v166_v13 = vmax.f32 %v161_v10, 0.0  ;;  %v167_v16 = vpack.c.bf16 %v165_v11, %v165_v11 }
 0x14f   :  { %v163_v14 = vpop.f32.mrf.mxu0 }
 0x150   :  { %v168_v15 = vpack.c.bf16 %v166_v13, %v166_v13 }
 0x152   :  { %406 = vmatprep.mubr.bf16.mxu1 %v168_v15 }
 0x153   :  { %407 = vmatmul.mubr.bf16.vlgmr.msra.gmra.mxu1 %v167_v16 }
 0x213   :  { %v408_v24 = vpop.f32.mrf.mxu1 }
 0x214   :  { %v409_v25 = vadd.f32 %v408_v24, %v207_v22 }
 0x215   :  { %v410_v26 = vpop.f32.mrf.mxu1 }
 0x216   :  { %v411_v27 = vadd.f32 %v410_v26, %v211_v23  ;;  %v415_v28 = vmax.f32 %v409_v25, 0.0 }
 0x217   :  { %v412_v29 = vpop.f32.mrf.mxu1 }
 0x218   :  { %v416_v30 = vmax.f32 %v411_v27, 0.0  ;;  %v417_v33 = vpack.c.bf16 %v415_v28, %v415_v28 }
 0x219   :  { %v413_v31 = vpop.f32.mrf.mxu1 }
 0x21a   :  { %v418_v32 = vpack.c.bf16 %v416_v30, %v416_v30 }
 0x21c   :  { %584 = vmatprep.mubr.bf16.mxu0 %v418_v32 }
 0x21d   :  { %585 = vmatmul.mubr.bf16.vlgmr.msra.gmra.mxu0 %v417_v33 }
 0x2dd   :  { %v677_v34 = vpop.f32.mrf.mxu0 }
 0x2df   :  { %v678_v36 = vpop.f32.mrf.mxu0 }
 0x2e0   :  { %v679_v37 = vadd.f32 %v678_v36, %v677_v34 }
 0x2e1   :  { %v680_v38 = vpop.f32.mrf.mxu0 }
 0x2e2   :  { %v587_v39 = vadd.f32 %v679_v37, %v644_v35 }
 0x2e3   :  { %v681_v40 = vpop.f32.mrf.mxu0 }
 0x2e4   :  { %762 = vtanh.f32 %v587_v39 }
 0x2f1   :  { %v763_v42 = vpop.eup %762 }
 0x2f2   :  { %v595_v43 = vmul.f32 %v763_v42, %v594_v41 }
 0x2f4   :  { %597 = vst.msk [vmem:[%s945_s9] sm:$0xff] %vm596_vm5, %v595_v43 }
 0x2f5   :  { %602 = vsyncpa [#allocation4], 1 }

</bundles_post_ra>
